<compile_context>
chip_gen: v7x
topology: tpu7x:2x2x1
jax: 0.10.0
libtpu: 0.0.40
codegen_flags: <defaults>
</compile_context>

<pallas_src>
import math
import jax
import jax.numpy as jnp
from jax.experimental import pallas as pl
from jax.experimental.pallas import tpu as pltpu


# ---------------------------------------------------------------------------
# Kernel
# ---------------------------------------------------------------------------
def positional_encoding_kernel(x_ref, pe_ref, o_ref):
    """x_ref: (TB, TL)  batch-tile x (seq*hidden)-tile of the input
    pe_ref: (1,  TL)  positional-encoding slab, broadcast over the batch tile
    o_ref : (TB, TL)  output (aliased with x)
    """
    o_ref[...] = x_ref[...] + pe_ref[...]


# ---------------------------------------------------------------------------
# Constant prep: exact JAX mirror of the PyTorch buffer construction.
# ---------------------------------------------------------------------------
def make_pe_table(hidden_size, max_len=1024, dtype=jnp.float32):
    position = jnp.arange(max_len, dtype=jnp.float32)[:, None]          # (L, 1)
    div_term = jnp.exp(
        jnp.arange(0, hidden_size, 2, dtype=jnp.float32)
        * (-math.log(10000.0) / hidden_size))                           # (H/2,)
    ang = position * div_term                                           # (L, H/2)
    pe = jnp.zeros((max_len, hidden_size), jnp.float32)
    pe = pe.at[:, 0::2].set(jnp.sin(ang))
    pe = pe.at[:, 1::2].set(jnp.cos(ang))
    return pe.astype(dtype)


# ---------------------------------------------------------------------------
# Tile sizing helpers (sublane-padding aware)
# ---------------------------------------------------------------------------
_LANE = 128
# Target for the total double-buffered, sublane-padded pipeline footprint.
_PIPELINE_BUDGET = 20 * 1024 * 1024


def _sublane_quantum(dtype):
    """VMEM sublane tiling quantum: 8 rows for 32-bit, 16 for 16-bit, 32 for 8-bit."""
    bits = jnp.dtype(dtype).itemsize * 8
    if bits >= 32:
        return 8
    if bits == 16:
        return 16
    return 32


def _pad_rows(rows, q):
    return ((rows + q - 1) // q) * q


def _pick_batch_tile(B, q, cap=64):
    """Sublane-friendly batch tile. Either the full batch dim (always a legal
    block) or a multiple of the sublane quantum q."""
    if B <= q:
        return B
    upper = min(cap, (B // q) * q)
    for tb in range(upper, q - 1, -q):
        if B % tb == 0:
            return tb
    return q  # q-multiple that does not divide B: ragged last tile is masked


def _pick_lane_tile(L, max_elems):
    """128-aligned lane tile <= max_elems. Prefers a divisor of L (all stores
    unmasked); otherwise returns a non-dividing 128-aligned tile and lets
    Pallas mask the ragged final block.  Never returns more than max_elems
    unless L itself fits, so the tile can never blow past the VMEM budget."""
    if L <= max_elems:
        return L
    cap = max(_LANE, (max_elems // _LANE) * _LANE)
    cand = cap
    while cand >= _LANE:
        if L % cand == 0:
            return cand
        cand -= _LANE
    return cap


# ---------------------------------------------------------------------------
# Wrapper
# ---------------------------------------------------------------------------
def positional_encoding(x, pe):
    """x: (B, S, H); pe: (max_len, H) precomputed table. Returns x + pe[None,:S,:].

    Output dtype follows x.dtype (pe is cast to x.dtype before the add).  Note:
    PyTorch's `x + pe` with an f32 buffer would promote a bf16 x to f32 instead;
    for f32 inputs (the module's usual case) the two are identical.
    """
    if x.ndim != 3:
        raise ValueError(f"expected (B, S, H) input, got shape {x.shape}")
    B, S, H = x.shape
    if S > pe.shape[0]:
        raise ValueError(f"sequence length {S} exceeds max_len {pe.shape[0]}")
    if H != pe.shape[1]:
        raise ValueError(f"hidden size mismatch: x has {H}, pe has {pe.shape[1]}")

    L = S * H
    itemsize = jnp.dtype(x.dtype).itemsize

    # Layout plumbing (free): flatten (S, H) into one lane-dense axis.
    x2 = x.reshape(B, L)
    pe2 = pe[:S].astype(x.dtype).reshape(1, L)

    q = _sublane_quantum(x.dtype)
    tb = _pick_batch_tile(B, q)

    # Padded double-buffered footprint per lane element:
    #   x(2 bufs) + out(2 bufs) at pad(tb) rows  +  pe(2 bufs) at pad(1)=q rows.
    bytes_per_lane = 2 * itemsize * (2 * _pad_rows(tb, q) + _pad_rows(1, q))
    tl = _pick_lane_tile(L, max(_LANE, _PIPELINE_BUDGET // bytes_per_lane))

    # Guarantee >= 2 grid programs (preferably along the lane axis) so v7x can
    # shard DMA issue across its 2 TensorCores.  No-op on single-TC v5e/v6e,
    # and skipped for tiny arrays where splitting would only add overhead.
    if pl.cdiv(L, tl) * pl.cdiv(B, tb) < 2 and L >= 2 * _LANE:
        tl = pl.cdiv(pl.cdiv(L, 2), _LANE) * _LANE

    grid = (pl.cdiv(L, tl), pl.cdiv(B, tb))  # batch innermost -> pe block index
                                             # constant across batch tiles.

    # Explicit scoped-VMEM limit sized to the actual padded footprint so tile
    # math changes can never silently trip a per-generation default.
    footprint = 2 * itemsize * tl * (2 * _pad_rows(tb, q) + _pad_rows(1, q))
    vmem_limit = int(min(40 * 1024 * 1024,
                         max(8 * 1024 * 1024, footprint + 4 * 1024 * 1024)))

    out2 = pl.pallas_call(
        positional_encoding_kernel,
        out_shape=jax.ShapeDtypeStruct((B, L), x.dtype),
        grid=grid,
        in_specs=[
            pl.BlockSpec((tb, tl), lambda l, b: (b, l)),   # x
            pl.BlockSpec((1, tl), lambda l, b: (0, l)),    # pe (batch-broadcast)
        ],
        out_specs=pl.BlockSpec((tb, tl), lambda l, b: (b, l)),
        # Output aliases x: no extra HBM output allocation for this in-place-able add.
        input_output_aliases={0: 0},
        cost_estimate=pl.CostEstimate(
            flops=B * L,
            transcendentals=0,
            bytes_accessed=itemsize * (2 * B * L + L)),
        compiler_params=pltpu.CompilerParams(
            dimension_semantics=("parallel", "parallel"),
            vmem_limit_bytes=vmem_limit),
    )(x2, pe2)

    return out2.reshape(B, S, H)


def positional_encoding_ref(x, pe):
    """Plain-JAX reference mirroring the PyTorch forward."""
    return x + pe[None, :x.shape[1], :].astype(x.dtype)


# ---------------------------------------------------------------------------
# Self-test
# ---------------------------------------------------------------------------
if __name__ == "__main__":
    max_len = 1024

    # Primary small shape consistent with the module's usage.
    B, S, H = 2, 16, 32
    x = jax.random.normal(jax.random.PRNGKey(0), (B, S, H), jnp.float32)
    pe = make_pe_table(H, max_len=max_len)
    ref = positional_encoding_ref(x, pe)
    out = jax.block_until_ready(positional_encoding(x, pe))
    assert out.shape == (B, S, H) and out.dtype == jnp.float32
    assert jnp.allclose(out, ref, atol=1e-6, rtol=1e-6), (
        float(jnp.max(jnp.abs(out - ref))))

    # Second shape that exercises the multi-program grid / lane split path.
    B2, S2, H2 = 4, 64, 128
    xb = jax.random.normal(jax.random.PRNGKey(1), (B2, S2, H2), jnp.float32)
    peb = make_pe_table(H2, max_len=max_len)
    refb = positional_encoding_ref(xb, peb)
    outb = jax.block_until_ready(positional_encoding(xb, peb))
    assert jnp.allclose(outb, refb, atol=1e-6, rtol=1e-6), (
        float(jnp.max(jnp.abs(outb - refb))))

    print("KERNEL_OK")
</pallas_src>

<mosaic_0001>
module attributes {stable_mosaic.version = 11 : i64} {
  func.func @positional_encoding_kernel(%arg0: i32, %arg1: i32, %arg2: memref<2x256xf32, #tpu.memory_space<vmem>>, %arg3: memref<1x256xf32, #tpu.memory_space<vmem>>, %arg4: memref<2x256xf32, #tpu.memory_space<vmem>>) attributes {dimension_semantics = [#tpu.dimension_semantics<parallel>, #tpu.dimension_semantics<parallel>], iteration_bounds = array<i64: 2, 1>, scalar_prefetch = 0 : i64, scratch_operands = 0 : i64, tpu.core_type = #tpu.core_type<tc>, window_params = [{transform_indices = @transform_0, window_bounds = array<i64: 2, 256>}, {transform_indices = @transform_1, window_bounds = array<i64: 1, 256>}, {transform_indices = @transform_2, window_bounds = array<i64: 2, 256>}]} {
    %c0 = arith.constant 0 : index
    %c0_0 = arith.constant 0 : index
    %0 = vector.load %arg2[%c0, %c0_0] : memref<2x256xf32, #tpu.memory_space<vmem>>, vector<2x256xf32>
    %c0_1 = arith.constant 0 : index
    %c0_2 = arith.constant 0 : index
    %1 = vector.load %arg3[%c0_1, %c0_2] : memref<1x256xf32, #tpu.memory_space<vmem>>, vector<1x256xf32>
    %2 = vector.broadcast %1 : vector<1x256xf32> to vector<2x256xf32>
    %3 = arith.addf %0, %2 : vector<2x256xf32>
    %c0_3 = arith.constant 0 : index
    %c0_4 = arith.constant 0 : index
    %4 = vector.load %arg4[%c0_3, %c0_4] : memref<2x256xf32, #tpu.memory_space<vmem>>, vector<2x256xf32>
    tpu.vector_store %arg4[%c0_3, %c0_4], %3 {strides = array<i32>} : memref<2x256xf32, #tpu.memory_space<vmem>>, vector<2x256xf32>,
    return
  }
  func.func @transform_0(%arg0: i32, %arg1: i32) -> (i32, i32) {
    %c0_i32 = arith.constant 0 : i32
    return %arg1, %arg0 : i32, i32
  }
  func.func @transform_1(%arg0: i32, %arg1: i32) -> (i32, i32) {
    %c0_i32 = arith.constant 0 : i32
    %c0_i32_0 = arith.constant 0 : i32
    return %c0_i32, %arg0 : i32, i32
  }
  func.func @transform_2(%arg0: i32, %arg1: i32) -> (i32, i32) {
    %c0_i32 = arith.constant 0 : i32
    return %arg1, %arg0 : i32, i32
  }
}

</mosaic_0001>

<bundles_post_ra>
// kernel: tpu_custom_call.1
= control target key start
LH: loop header
LB: loop body
LE: loop exit
PB: predicated region body
PF: predicated region fallthrough
CT: control target
= control target key end

     0   :  { %7 = vsyncpa [#allocation3], 0  ;;  %s720_s0 = inlined_call_operand.hbm [shape: f32[2,512], index: 0, kind: input, shape index: {}, may-alias: {0,2}]   ;;  %s721_s1 = inlined_call_operand.vmem [shape: f32[1,512], index: 1, kind: input, shape index: {}]   ;;  %s722_s2 = inlined_call_operand.hbm [shape: f32[2,512], index: 2, kind: output, shape index: {}, may-alias: {0,2}]  }
   0x1   :  { %9 = vsyncpa [#allocation3 + $0x1], 0 }
   0x2   :  { %10 = vsyncpa [#allocation4], 0 }
   0x3   :  { %12 = vsyncpa [#allocation4 + $0x1], 0  ;;  %s544_s9 = smov 0   ;;  %s546_s10 = smov 0  }
   0x4   :  { %s548_s11 = smov 0   ;;  %s550_s12 = smov 0  }
   0x5   :  { %s552_s13 = smov 0   ;;  %s554_s14 = smov 0  }
   0x6 LB: > { %s331_s15 = sadd.s32 4294967295, %s524_s14   ;;  %s332_s16 = sadd.s32 4294967294, %s524_s14   ;;  %s524_s14 = sphi %s554_s14, %s18_s14   ;;  %s520_s13 = sphi %s552_s13, %s738_s13   ;;  %s516_s12 = sphi %s550_s12, %s737_s12   ;;  %s512_s11 = sphi %s548_s11, %s736_s11   ;;  %s508_s10 = sphi %s546_s10, %s735_s10   ;;  %s504_s9 = sphi %s544_s9, %s734_s9  }
   0x7   : > { %s30_s17 = sadd.s32 1, %s520_s13  ;;  %s39_s18 = sadd.s32 1, %s512_s11 }
   0x8   : > { %p32_p0 = scmp.ge.s32.totalorder %s30_s17, 2  ;;  %p46_p1 = scmp.ne.s32.totalorder %s512_s11, %s508_s10 }
   0x9   : > { %p47_p2 = scmp.eq.s32.totalorder %s524_s14, 0  ;;  %p52_p3 = scmp.ne.s32.totalorder %s508_s10, %s504_s9 }
   0xa   : > { %s740_s17 = smov (%p32_p0, %s30_s17), 0  ;;  %p53_p5 = scmp.eq.s32.totalorder %s331_s15, 0 }
   0xb   : > { %p585_p4 = por %p47_p2, %p46_p1  ;;  %s35_s20 = ssub.s32 %s520_s13, %s740_s17 }
   0xc   : > { %p104_p6 = scmp.eq.s32.totalorder %s331_s15, 1  ;;  %p37_p7 = scmp.eq.s32.totalorder %s35_s20, 0 }
   0xd   : > { %p591_p8 = por %p53_p5, %p52_p3  ;;  %p110_p10 = scmp.eq.s32.totalorder %s332_s16, 1 }
   0xe   : > { %p595_p9 = por %p104_p6, %p46_p1  ;;  %p361_p13 = scmp.lt.s32.totalorder %s524_s14, 2 }
   0xf   : > { %s600_s23 = scalar_select %p37_p7, %s512_s11, %s39_s18  }
  0x10   : > { %s726_s22 = scalar_select %p595_p9, 1, 0 }
  0x11   : > { %p602_p11 = por %p110_p10, %p52_p3  ;;  %s130_s25 = sand.u32 1, %s512_s11  }
  0x12   : > { %s335_s26 = sshll.u32 %s130_s25, 2  ;;  %s347_s27 = sshll.u32 %s520_s13, 6 }
  0x13   : > { %s727_s24 = scalar_select %p602_p11, 1, 0 }
  0x14   : > { %s613_s30 = scalar_lea.hbm %s720_s0, %s347_s27  ;;  %s134_s3 = scalar_lea.vmem [#allocation2], %s335_s26 }
  0x15   : > { %s144_s4 = sshll.u32 %s134_s3, 4  ;;  %p619_p0 = pnand %p361_p13, %p585_p4  ;;  %s615_s4 = int_to_ptr.vmem [resolvable:$true] %s144_s4 }
  0x16   : > { %s131_s6 = scalar_lea.sflag [#allocation3], %s130_s25  ;;  %s412_s7 = scalar_lea.hbm %s613_s30, 64 }
  0x17   : > { %p413_p3 = scmp.ne.s32.totalorder %s613_s30, %s412_s7  ;;  %p414_p5 = pneg %p619_p0 }
  0x18   : > { %s417_s16 = scalar_lea.hbm %s720_s0, 128  ;;  %p418_p4 = scmp.lt.u32.totalorder %s613_s30, %s720_s0 }
  0x19   : > { %p415_p6 = pnand %p414_p5, %p413_p3  ;;  %p419_p10 = scmp.lt.u32.totalorder %s417_s16, %s412_s7 }
  0x1a   : > { %p421_p12 = scmp.lt.u32.totalorder %s412_s7, %s613_s30 }
  0x1b   : > { %p416_p7 = pneg %p415_p6  ;;  %p420_p13 = por %p419_p10, %p418_p4 }
  0x1d   : > { %p422_p1 = por %p421_p12, %p420_p13 }
  0x1f   : > { %p423_p2 = pnand %p422_p1, %p416_p7 }
  0x21   : > { %426 = shalt.err (!%p423_p2)
}
  0x22   : > { %s427_s20 = scalar_lea.vmem %s615_s4, 64  ;;  %s526_s25 = smov [#allocation2]  }
  0x23   : > { %p428_p3 = scmp.ne.s32.totalorder %s615_s4, %s427_s20  ;;  %s432_s26 = sshll.u32 %s526_s25, 4  ;;  %s433_s26 = int_to_ptr.vmem [resolvable:$false] %s432_s26 }
  0x24   : > { %s434_s27 = scalar_lea.vmem %s433_s26, 128  ;;  %p435_p9 = scmp.lt.s32.totalorder %s615_s4, %s433_s26 }
  0x25   : > { %p430_p6 = pnand %p428_p3, %p414_p5  ;;  %p436_p4 = scmp.lt.s32.totalorder %s434_s27, %s427_s20 }
  0x27   : > { %p431_p11 = pneg %p430_p6  ;;  %p437_p10 = por %p436_p4, %p435_p9 }
  0x29   : > { %p438_p12 = pnand %p437_p10, %p431_p11 }
  0x2b   : > { %441 = shalt.err (!%p438_p12)
}
  0x2c   : > { %356 = dma.hbm_to_vmem [thread:$0]  (!%p619_p0), %s613_s30, 64, %s615_s4, %s131_s6  }
  0x2d   : > { %p729_p1 = scmp.lt.s32.totalorder %s524_s14, 3  ;;  %p730_p2 = scmp.ge.s32.totalorder %s524_s14, 1 }
  0x2f   : > { %p158_p5 = pnand %p730_p2, %p729_p1 }
  0x30   : > { %s655_s28 = sand.u32 (!%p158_p5), 1, %s508_s10  }
  0x31   : > { %161 = sbr.rel (%p158_p5) target bundleno = 85 (0x55), region = 28  ;;  %s339_s29 = sshll.u32 (!%p158_p5), %s655_s28, 2 }
  0x32   : > { %s164_s3 = scalar_lea.sflag (!%p158_p5), [#allocation3], %s655_s28  ;;  %s167_s7 = scalar_lea.vmem (!%p158_p5), [#allocation2], %s339_s29 }
  0x38   : > { %495 = dma.done.wait (%p591_p8), %s164_s3, 64  }
  0x39   : > { %497 = vsyncadd (%p591_p8), %s164_s3, 4294967232  ;;  %s341_s30 = sshll.u32 %s516_s12, 1  ;;  %v202_v0 = vlaneseq  ;;  %v527_v1 = vmov 1983009808   ;;  %s191_s21 = scalar_lea.vmem [#allocation5], %s339_s29 }
  0x3a   : > { %p194_p9 = scmp.lt.s32.totalorder %s341_s30, 3  ;;  %v212_v2 = vunpack.c.l.s4 %v527_v1  ;;  %s238_s8 = sshll.u32 %s191_s21, 4  ;;  %v199_v12 = vld [vmem:[%s167_s7] sm:$0xf]  ;;  %s668_s8 = int_to_ptr.vmem [resolvable:$true] %s238_s8 }
  0x3b   : > { %v203_v3 = vshrl.u32 %v202_v0, 7  ;;  %s348_s15 = sshll.u32 %s516_s12, 6  ;;  %s222_s20 = scalar_lea.sflag [#allocation4], %s655_s28 }
  0x3c   : > { %s742_s30 = smov (!%p194_p9, %s341_s30), 3  ;;  %v213_v6 = vunpack.c.0.s8 %v212_v2  ;;  %s673_s19 = scalar_lea.hbm %s722_s2, %s348_s15 }
  0x3d   : > { %v204_v4 = vsub.s32 0, %v203_v3  ;;  %v208_v5 = vsub.s32 1, %v203_v3  ;;  %s196_s6 = scalar_lea.vmem %s721_s1, %s742_s30  ;;  %s442_s25 = scalar_lea.vmem %s668_s8, 64 }
  0x3e   : > { %v200_v7 = vld [vmem:[%s196_s6] sm:$0x3]  ;;  %v216_v10 = vsub.s32 %v213_v6, %v203_v3  ;;  %p443_p8 = scmp.ne.s32.totalorder %s668_s8, %s442_s25  ;;  %p731_p11 = scmp.ne.s32.totalorder %s726_s22, 0 }
  0x3f   : > { %v205_v8 = vrot.slane %v200_v7, %v204_v4  ;;  %v209_v9 = vrot.slane %v200_v7, %v208_v5  ;;  %s528_s12 = smov [#allocation5]  }
  0x40   : > { %p444_p0 = pnand %p443_p8, %p731_p11  ;;  %s446_s26 = sshll.u32 %s528_s12, 4  ;;  %s447_s26 = int_to_ptr.vmem [resolvable:$false] %s446_s26 }
  0x41   : > { %v210_v11 = vcombine.low %v205_v8, %v209_v9  ;;  %s448_s27 = scalar_lea.vmem %s447_s26, 128  ;;  %p449_p13 = scmp.lt.s32.totalorder %s668_s8, %s447_s26 }
  0x42   : > { %p445_p7 = pneg %p444_p0  ;;  %p450_p3 = scmp.lt.s32.totalorder %s448_s27, %s442_s25 }
  0x43   : > { %v217_v13 = vrot.slane %v210_v11, %v216_v10 }
  0x44   : > { %p451_p6 = por %p450_p3, %p449_p13 }
  0x45   : > { %v219_v14 = vadd.f32 %v217_v13, %v199_v12 }
  0x46   : > { %p452_p4 = pnand %p451_p6, %p445_p7 }
  0x47   : > { %220 = vst [vmem:[%s191_s21] sm:$0xf] %v219_v14 }
  0x48   : > { %455 = shalt.err (!%p452_p4)
}
  0x49   : > { %s456_s28 = scalar_lea.hbm %s673_s19, 64  ;;  %s460_s7 = scalar_lea.hbm %s722_s2, 128 }
  0x4a   : > { %p457_p10 = scmp.ne.s32.totalorder %s673_s19, %s456_s28  ;;  %p461_p2 = scmp.lt.u32.totalorder %s673_s19, %s722_s2 }
  0x4b   : > { %p462_p5 = scmp.lt.u32.totalorder %s460_s7, %s456_s28  ;;  %p464_p8 = scmp.lt.u32.totalorder %s456_s28, %s673_s19 }
  0x4c   : > { %p458_p12 = pnand %p457_p10, %p731_p11 }
  0x4d   : > { %p463_p9 = por %p462_p5, %p461_p2 }
  0x4e   : > { %p459_p1 = pneg %p458_p12 }
  0x4f   : > { %p465_p0 = por %p464_p8, %p463_p9 }
  0x51   : > { %p466_p7 = pnand %p465_p0, %p459_p1 }
  0x53   : > { %469 = shalt.err (!%p466_p7)
}
  0x54   : > { %351 = dma.vmem_to_hbm [thread:$0]  (%p731_p11), %s668_s8, 64, %s673_s19, %s222_s20  }
  0x55 PF: > { %s250_s5 = sand.u32 1, %s504_s9   ;;  %p732_p13 = scmp.ne.s32.totalorder %s727_s24, 0 }
  0x56   : > { %p733_p3 = scmp.ge.s32.totalorder %s524_s14, 2  ;;  %s251_s6 = scalar_lea.sflag [#allocation4], %s250_s5 }
  0x58   : > { %p358_p6 = pnand %p733_p3, %p732_p13 }
  0x5a   : > { %499 = dma.done.wait (!%p358_p6), %s251_s6, 64  }
  0x5b   : > { %501 = vsyncadd (!%p358_p6), %s251_s6, 4294967232  ;;  %s18_s14 = sadd.s32 1, %s524_s14   ;;  %s734_s9 = smov %s508_s10 }
  0x5c   : > { %p15_p4 = scmp.ge.s32.totalorder %s18_s14, 4   ;;  %s735_s10 = smov %s512_s11 }
  0x5d   : > { %s736_s11 = smov %s600_s23  ;;  %s737_s12 = smov %s520_s13 }
  0x5e   : > { %s738_s13 = smov %s740_s17  ;;  %17 = sbr.rel (!%p15_p4) target bundleno = 6 (0x6), region = 76 }
  0x65   :  { %256 = vsyncpa [#allocation3], 1 }
  0x66   :  { %258 = vsyncpa [#allocation3 + $0x1], 1 }
  0x67   :  { %259 = vsyncpa [#allocation4], 1 }
  0x68   :  { %261 = vsyncpa [#allocation4 + $0x1], 1 }

</bundles_post_ra>
